<compile_context>
chip_gen: v5e
topology: v5e:2x2
jax: 0.10.0
libtpu: 0.0.40
codegen_flags: <defaults>
</compile_context>

<pallas_src>
import jax
import jax.numpy as jnp
from jax import lax
from jax.experimental import pallas as pl
from jax.experimental.pallas import tpu as pltpu

ALPHA = 0.2  # LeakyReLU negative slope


# ------------------------------ fused kernel ------------------------------- #

def gat_fused_kernel(x_ref, wcat_ref, wlt_ref, a3w_ref, adjt_ref, out_ref):
    """One graph per grid step, all heads fused.

    x_ref    : [N, Din]           bf16  node features
    wcat_ref : [Din, Wpad]        bf16  [ W (H*D cols) | WR (H cols) | 0-pad ]
    wlt_ref  : [H, Din]           bf16  pre-folded attn_l weights (transposed)
    a3w_ref  : [N_dst, H*N_src]   f32   edge projection, dst-major (src on lanes)
    adjt_ref : [N_dst, N_src]     f32   adjacency transposed (adjt[v,u]=adj[u,v])
    out_ref  : [N_dst, H*D]       f32
    """
    num_heads, _ = wlt_ref.shape
    n_dst, hd = out_ref.shape
    d = hd // num_heads
    n_src = adjt_ref.shape[1]

    x = x_ref[...]                                                  # bf16

    # Fused feature + a2 projection: one MXU pass, f32 accumulation.
    big = jnp.dot(x, wcat_ref[...],
                  preferred_element_type=jnp.float32)               # [N, Wpad]
    ft = big[:, :hd]                                                # [N_src, H*D]
    a2_cols = big[:, hd:hd + num_heads]                             # [N_dst, H]

    # a1 for all heads, output already [H, N_src] (no in-kernel transpose).
    a1_rows = lax.dot_general(wlt_ref[...], x, (((1,), (1,)), ((), ())),
                              preferred_element_type=jnp.float32)   # [H, N_src]

    ft_b = ft.astype(jnp.bfloat16)        # cast once for the aggregation matmuls

    adjt = adjt_ref[...]
    mask = adjt > 0                       # head-invariant, hoisted out of the loop
    a3w = a3w_ref[...]

    for h in range(num_heads):            # static unroll, everything 2-D
        # edge_attention: leaky_relu(a1_src + a2_dst + a3_edge)   (all f32)
        e = a1_rows[h:h + 1, :] + a2_cols[:, h:h + 1] \
            + a3w[:, h * n_src:(h + 1) * n_src]                     # [N_dst, N_src]
        e = jnp.where(e > 0, e, ALPHA * e)
        e = jnp.where(mask, e, jnp.float32(-1e30))                  # mask non-edges

        # EdgeSoftmax (lane reduce over incoming/source edges)
        e_max = jnp.max(e, axis=1, keepdims=True)                   # [N_dst, 1]
        score = jnp.exp(e - e_max)        # non-edges underflow to exactly 0
        z = jnp.sum(score, axis=1, keepdims=True)
        # NOTE: reference semantics give NaN for zero-in-degree nodes; this
        # guard deviates (returns 0) but is moot since self-loops are present.
        z = jnp.maximum(z, jnp.float32(1e-30))

        # update_all(src_mul_edge, sum) / z  — bf16 MXU, f32 accumulate
        agg = jnp.dot(score.astype(jnp.bfloat16), ft_b[:, h * d:(h + 1) * d],
                      preferred_element_type=jnp.float32)           # [N_dst, D]
        out_ref[:, h * d:(h + 1) * d] = agg * pl.reciprocal(z, approx=True)


# -------------------------------- wrapper ---------------------------------- #

def graph_attention(x, w_heads, attn_l, attn_r, attn_e, edge_feat, adj,
                    num_heads, out_dim):
    """Batched GAT forward.

    x:[B,N,Din]  w_heads:[H,Din,D]  attn_l/attn_r:[H,D,1]  attn_e:[E_in,H]
    edge_feat:[B,N*N,E_in] (row u*N+v = edge u->v)   adj:[B,N,N] (adj[u,v]=1)
    returns [B, N, H, D]  (PyTorch ret shape [N, num_heads, out_dim] per graph).
    """
    B, N, in_dim = x.shape
    H, D = num_heads, out_dim
    f32, bf16 = jnp.float32, jnp.bfloat16

    # ---- parameter folding (pure re-association, done once) ----
    W = w_heads.transpose(1, 0, 2).reshape(in_dim, H * D)            # [Din, H*D]
    WR = jnp.einsum('hid,hd->ih', w_heads, attn_r[:, :, 0])          # [Din, H]
    WLT = jnp.einsum('hid,hd->hi', w_heads, attn_l[:, :, 0])         # [H, Din]
    wcat = jnp.concatenate([W, WR], axis=1)                          # [Din, H*D+H]
    pad = (-wcat.shape[1]) % 128                                     # lane-pad to 128
    wcat = jnp.pad(wcat, ((0, 0), (0, pad)))
    wpad = wcat.shape[1]

    # ---- edge projection (tiny matmul) + dst-major layout plumbing ----
    # a3w[b, v, h*N + u] = edge_feat[b, u*N + v, :] . attn_e[:, h]
    a3 = jnp.einsum('bec,ch->beh', edge_feat, attn_e)                # [B, N*N, H]
    a3w = a3.reshape(B, N, N, H).transpose(0, 2, 3, 1).reshape(B, N, H * N)
    adjt = jnp.swapaxes(adj, 1, 2)                                   # [B, N_dst, N_src]

    out_flat = pl.pallas_call(
        gat_fused_kernel,
        out_shape=jax.ShapeDtypeStruct((B, N, H * D), f32),
        grid=(B,),
        in_specs=[
            pl.BlockSpec((None, N, in_dim), lambda b: (b, 0, 0)),    # x (bf16)
            pl.BlockSpec((in_dim, wpad), lambda b: (0, 0)),          # Wcat, resident
            pl.BlockSpec((H, in_dim), lambda b: (0, 0)),             # WL^T, resident
            pl.BlockSpec((None, N, H * N), lambda b: (b, 0, 0)),     # a3 (dst-major)
            pl.BlockSpec((None, N, N), lambda b: (b, 0, 0)),         # adj^T
        ],
        out_specs=pl.BlockSpec((None, N, H * D), lambda b: (b, 0, 0)),
        compiler_params=pltpu.CompilerParams(
            dimension_semantics=("parallel",)),
    )(x.astype(bf16), wcat.astype(bf16), WLT.astype(bf16),
      a3w.astype(f32), adjt.astype(f32))

    return out_flat.reshape(B, N, H, D)


# --------------------------- pure-JAX reference ----------------------------- #

def reference(x, w_heads, attn_l, attn_r, attn_e, edge_feat, adj, alpha):
    high = lax.Precision.HIGHEST
    N = x.shape[0]
    ft = jnp.einsum('ni,hid->nhd', x, w_heads, precision=high)       # [N, H, D]
    a1 = jnp.einsum('nhd,hd->nh', ft, attn_l[:, :, 0], precision=high)
    a2 = jnp.einsum('nhd,hd->nh', ft, attn_r[:, :, 0], precision=high)
    a3 = jnp.einsum('ec,ch->eh', edge_feat, attn_e,
                    precision=high).reshape(N, N, -1)                # [u, v, h]
    e = a1[:, None, :] + a2[None, :, :] + a3
    e = jnp.where(e > 0, e, alpha * e)
    mask = adj[:, :, None] > 0
    e = jnp.where(mask, e, -1e30)
    e_max = jnp.max(e, axis=0, keepdims=True)
    score = jnp.exp(e - e_max) * adj[:, :, None]
    z = jnp.sum(score, axis=0)                                       # [v, h]
    out = jnp.einsum('uvh,uhd->vhd', score, ft, precision=high)
    return out / z[:, :, None]


# ----------------------------------- main ----------------------------------- #

if __name__ == "__main__":
    key = jax.random.PRNGKey(0)
    B, N, in_dim, out_dim, num_heads, edge_in_dim = 2, 16, 16, 16, 4, 8
    ks = jax.random.split(key, 7)

    def xavier(k, shape, fan_in, fan_out):
        std = 1.414 * (2.0 / (fan_in + fan_out)) ** 0.5
        return std * jax.random.normal(k, shape, jnp.float32)

    x = jax.random.normal(ks[0], (B, N, in_dim), jnp.float32)
    w_heads = xavier(ks[1], (num_heads, in_dim, out_dim),
                     in_dim, num_heads * out_dim)                    # fc weight (per head)
    attn_l = xavier(ks[2], (num_heads, out_dim, 1), out_dim, 1)
    attn_r = xavier(ks[3], (num_heads, out_dim, 1), out_dim, 1)
    attn_e = xavier(ks[4], (edge_in_dim, num_heads), edge_in_dim, num_heads)
    edge_feat = jax.random.normal(ks[5], (B, N * N, edge_in_dim), jnp.float32)
    adj = (jax.random.uniform(ks[6], (B, N, N)) < 0.35).astype(jnp.float32)
    adj = jnp.maximum(adj, jnp.eye(N, dtype=jnp.float32)[None])      # self loops

    out = graph_attention(x, w_heads, attn_l, attn_r, attn_e, edge_feat, adj,
                          num_heads, out_dim)
    out = jax.block_until_ready(out)

    ref = jax.vmap(
        lambda xb, eb, ab: reference(xb, w_heads, attn_l, attn_r, attn_e,
                                     eb, ab, ALPHA))(x, edge_feat, adj)

    assert out.shape == (B, N, num_heads, out_dim)
    max_err = float(jnp.max(jnp.abs(out - ref)))
    mean_err = float(jnp.mean(jnp.abs(out - ref)))
    # Tolerance widened vs. the f32-HIGHEST version: bf16 MXU operands
    # (~2^-9 relative per operand) compound through LeakyReLU + edge-softmax
    # + aggregation; reference is exact f32.
    assert mean_err < 2e-2, f"mean abs err {mean_err}"
    assert jnp.allclose(out, ref, atol=5e-2, rtol=5e-2), \
        f"max abs err {max_err}, mean abs err {mean_err}"

    print("KERNEL_OK")
</pallas_src>

<mosaic_0001>
module attributes {stable_mosaic.version = 11 : i64} {
  func.func @gat_fused_kernel(%arg0: i32, %arg1: memref<1x16x16xbf16, #tpu.memory_space<vmem>>, %arg2: memref<16x128xbf16, #tpu.memory_space<vmem>>, %arg3: memref<4x16xbf16, #tpu.memory_space<vmem>>, %arg4: memref<1x16x64xf32, #tpu.memory_space<vmem>>, %arg5: memref<1x16x16xf32, #tpu.memory_space<vmem>>, %arg6: memref<1x16x64xf32, #tpu.memory_space<vmem>>) attributes {dimension_semantics = [#tpu.dimension_semantics<parallel>], iteration_bounds = array<i64: 2>, scalar_prefetch = 0 : i64, scratch_operands = 0 : i64, tpu.core_type = #tpu.core_type<tc>, window_params = [{transform_indices = @transform_0, window_bounds = array<i64: 1, 16, 16>}, {pipeline_mode = #tpu.pipeline_mode<synchronous>, transform_indices = @transform_1, window_bounds = array<i64: 16, 128>}, {pipeline_mode = #tpu.pipeline_mode<synchronous>, transform_indices = @transform_2, window_bounds = array<i64: 4, 16>}, {transform_indices = @transform_3, window_bounds = array<i64: 1, 16, 64>}, {transform_indices = @transform_4, window_bounds = array<i64: 1, 16, 16>}, {transform_indices = @transform_5, window_bounds = array<i64: 1, 16, 64>}]} {
    %c0 = arith.constant 0 : index
    %c0_0 = arith.constant 0 : index
    %c0_1 = arith.constant 0 : index
    %0 = vector.load %arg1[%c0, %c0_0, %c0_1] : memref<1x16x16xbf16, #tpu.memory_space<vmem>>, vector<1x16x16xbf16>
    %1 = vector.shape_cast %0 : vector<1x16x16xbf16> to vector<16x16xbf16>
    %c0_2 = arith.constant 0 : index
    %c0_3 = arith.constant 0 : index
    %2 = vector.load %arg2[%c0_2, %c0_3] : memref<16x128xbf16, #tpu.memory_space<vmem>>, vector<16x128xbf16>
    %cst = arith.constant dense<0.000000e+00> : vector<16x128xf32>
    %3 = tpu.matmul %1, %2, %cst {dimension_numbers = #tpu.dot_dimension_numbers<[1], [0], [0], [1], [0, 0, 1, 1], [], []>} : vector<16x16xbf16>, vector<16x128xbf16>, vector<16x128xf32> -> vector<16x128xf32>
    %4 = vector.extract_strided_slice %3 {offsets = [0, 0], sizes = [16, 64], strides = [1, 1]} : vector<16x128xf32> to vector<16x64xf32>
    %5 = vector.extract_strided_slice %3 {offsets = [0, 64], sizes = [16, 4], strides = [1, 1]} : vector<16x128xf32> to vector<16x4xf32>
    %c0_4 = arith.constant 0 : index
    %c0_5 = arith.constant 0 : index
    %6 = vector.load %arg3[%c0_4, %c0_5] : memref<4x16xbf16, #tpu.memory_space<vmem>>, vector<4x16xbf16>
    %cst_6 = arith.constant dense<0.000000e+00> : vector<4x16xf32>
    %7 = tpu.matmul %6, %1, %cst_6 {dimension_numbers = #tpu.dot_dimension_numbers<[1], [1], [0], [0], [0, 0, 1, 0], [], []>} : vector<4x16xbf16>, vector<16x16xbf16>, vector<4x16xf32> -> vector<4x16xf32>
    %8 = arith.truncf %4 : vector<16x64xf32> to vector<16x64xbf16>
    %c0_7 = arith.constant 0 : index
    %c0_8 = arith.constant 0 : index
    %c0_9 = arith.constant 0 : index
    %9 = vector.load %arg5[%c0_7, %c0_8, %c0_9] : memref<1x16x16xf32, #tpu.memory_space<vmem>>, vector<1x16x16xf32>
    %10 = vector.shape_cast %9 : vector<1x16x16xf32> to vector<16x16xf32>
    %cst_10 = arith.constant 0.000000e+00 : f32
    %11 = vector.broadcast %cst_10 : f32 to vector<16x16xf32>
    %12 = arith.cmpf ogt, %10, %11 : vector<16x16xf32>
    %c0_11 = arith.constant 0 : index
    %c0_12 = arith.constant 0 : index
    %c0_13 = arith.constant 0 : index
    %13 = vector.load %arg4[%c0_11, %c0_12, %c0_13] : memref<1x16x64xf32, #tpu.memory_space<vmem>>, vector<1x16x64xf32>
    %14 = vector.shape_cast %13 : vector<1x16x64xf32> to vector<16x64xf32>
    %15 = vector.extract_strided_slice %7 {offsets = [0, 0], sizes = [1, 16], strides = [1, 1]} : vector<4x16xf32> to vector<1x16xf32>
    %16 = vector.extract_strided_slice %5 {offsets = [0, 0], sizes = [16, 1], strides = [1, 1]} : vector<16x4xf32> to vector<16x1xf32>
    %17 = vector.broadcast %15 : vector<1x16xf32> to vector<16x16xf32>
    %18 = vector.broadcast %16 : vector<16x1xf32> to vector<16x16xf32>
    %19 = arith.addf %17, %18 : vector<16x16xf32>
    %20 = vector.extract_strided_slice %14 {offsets = [0, 0], sizes = [16, 16], strides = [1, 1]} : vector<16x64xf32> to vector<16x16xf32>
    %21 = arith.addf %19, %20 : vector<16x16xf32>
    %cst_14 = arith.constant 0.000000e+00 : f32
    %22 = vector.broadcast %cst_14 : f32 to vector<16x16xf32>
    %23 = arith.cmpf ogt, %21, %22 : vector<16x16xf32>
    %cst_15 = arith.constant 2.000000e-01 : f32
    %24 = vector.broadcast %cst_15 : f32 to vector<16x16xf32>
    %25 = arith.mulf %24, %21 : vector<16x16xf32>
    %26 = arith.select %23, %21, %25 : vector<16x16xi1>, vector<16x16xf32>
    %cst_16 = arith.constant -1.000000e+30 : f32
    %27 = vector.broadcast %cst_16 : f32 to vector<16x16xf32>
    %28 = arith.select %12, %26, %27 : vector<16x16xi1>, vector<16x16xf32>
    %cst_17 = arith.constant dense<0xFF800000> : vector<16xf32>
    %29 = vector.multi_reduction <maximumf>, %28, %cst_17 [1] : vector<16x16xf32> to vector<16xf32>
    %30 = vector.shape_cast %29 : vector<16xf32> to vector<16x1xf32>
    %31 = vector.broadcast %30 : vector<16x1xf32> to vector<16x16xf32>
    %32 = arith.subf %28, %31 : vector<16x16xf32>
    %33 = math.exp %32 : vector<16x16xf32>
    %cst_18 = arith.constant dense<0.000000e+00> : vector<16xf32>
    %34 = vector.multi_reduction <add>, %33, %cst_18 [1] : vector<16x16xf32> to vector<16xf32>
    %35 = vector.shape_cast %34 : vector<16xf32> to vector<16x1xf32>
    %cst_19 = arith.constant 1.000000e-30 : f32
    %36 = vector.broadcast %cst_19 : f32 to vector<16x1xf32>
    %37 = arith.maximumf %35, %36 : vector<16x1xf32>
    %38 = arith.truncf %33 : vector<16x16xf32> to vector<16x16xbf16>
    %39 = vector.extract_strided_slice %8 {offsets = [0, 0], sizes = [16, 16], strides = [1, 1]} : vector<16x64xbf16> to vector<16x16xbf16>
    %cst_20 = arith.constant dense<0.000000e+00> : vector<16x16xf32>
    %40 = tpu.matmul %38, %39, %cst_20 {dimension_numbers = #tpu.dot_dimension_numbers<[1], [0], [0], [1], [0, 0, 1, 1], [], []>} : vector<16x16xbf16>, vector<16x16xbf16>, vector<16x16xf32> -> vector<16x16xf32>
    %41 = tpu.reciprocal %37 {approx = true} : vector<16x1xf32> -> vector<16x1xf32>
    %42 = vector.broadcast %41 : vector<16x1xf32> to vector<16x16xf32>
    %43 = arith.mulf %40, %42 : vector<16x16xf32>
    %c0_21 = arith.constant 0 : index
    %c0_22 = arith.constant 0 : index
    %c0_23 = arith.constant 0 : index
    %44 = vector.load %arg6[%c0_21, %c0_22, %c0_23] : memref<1x16x64xf32, #tpu.memory_space<vmem>>, vector<1x16x16xf32>
    %45 = vector.shape_cast %44 : vector<1x16x16xf32> to vector<16x16xf32>
    %46 = vector.shape_cast %43 : vector<16x16xf32> to vector<1x16x16xf32>
    tpu.vector_store %arg6[%c0_21, %c0_22, %c0_23], %46 {strides = array<i32>} : memref<1x16x64xf32, #tpu.memory_space<vmem>>, vector<1x16x16xf32>,
    %47 = vector.extract_strided_slice %7 {offsets = [1, 0], sizes = [1, 16], strides = [1, 1]} : vector<4x16xf32> to vector<1x16xf32>
    %48 = vector.extract_strided_slice %5 {offsets = [0, 1], sizes = [16, 1], strides = [1, 1]} : vector<16x4xf32> to vector<16x1xf32>
    %49 = vector.broadcast %47 : vector<1x16xf32> to vector<16x16xf32>
    %50 = vector.broadcast %48 : vector<16x1xf32> to vector<16x16xf32>
    %51 = arith.addf %49, %50 : vector<16x16xf32>
    %52 = vector.extract_strided_slice %14 {offsets = [0, 16], sizes = [16, 16], strides = [1, 1]} : vector<16x64xf32> to vector<16x16xf32>
    %53 = arith.addf %51, %52 : vector<16x16xf32>
    %cst_24 = arith.constant 0.000000e+00 : f32
    %54 = vector.broadcast %cst_24 : f32 to vector<16x16xf32>
    %55 = arith.cmpf ogt, %53, %54 : vector<16x16xf32>
    %cst_25 = arith.constant 2.000000e-01 : f32
    %56 = vector.broadcast %cst_25 : f32 to vector<16x16xf32>
    %57 = arith.mulf %56, %53 : vector<16x16xf32>
    %58 = arith.select %55, %53, %57 : vector<16x16xi1>, vector<16x16xf32>
    %cst_26 = arith.constant -1.000000e+30 : f32
    %59 = vector.broadcast %cst_26 : f32 to vector<16x16xf32>
    %60 = arith.select %12, %58, %59 : vector<16x16xi1>, vector<16x16xf32>
    %cst_27 = arith.constant dense<0xFF800000> : vector<16xf32>
    %61 = vector.multi_reduction <maximumf>, %60, %cst_27 [1] : vector<16x16xf32> to vector<16xf32>
    %62 = vector.shape_cast %61 : vector<16xf32> to vector<16x1xf32>
    %63 = vector.broadcast %62 : vector<16x1xf32> to vector<16x16xf32>
    %64 = arith.subf %60, %63 : vector<16x16xf32>
    %65 = math.exp %64 : vector<16x16xf32>
    %cst_28 = arith.constant dense<0.000000e+00> : vector<16xf32>
    %66 = vector.multi_reduction <add>, %65, %cst_28 [1] : vector<16x16xf32> to vector<16xf32>
    %67 = vector.shape_cast %66 : vector<16xf32> to vector<16x1xf32>
    %cst_29 = arith.constant 1.000000e-30 : f32
    %68 = vector.broadcast %cst_29 : f32 to vector<16x1xf32>
    %69 = arith.maximumf %67, %68 : vector<16x1xf32>
    %70 = arith.truncf %65 : vector<16x16xf32> to vector<16x16xbf16>
    %71 = vector.extract_strided_slice %8 {offsets = [0, 16], sizes = [16, 16], strides = [1, 1]} : vector<16x64xbf16> to vector<16x16xbf16>
    %cst_30 = arith.constant dense<0.000000e+00> : vector<16x16xf32>
    %72 = tpu.matmul %70, %71, %cst_30 {dimension_numbers = #tpu.dot_dimension_numbers<[1], [0], [0], [1], [0, 0, 1, 1], [], []>} : vector<16x16xbf16>, vector<16x16xbf16>, vector<16x16xf32> -> vector<16x16xf32>
    %73 = tpu.reciprocal %69 {approx = true} : vector<16x1xf32> -> vector<16x1xf32>
    %74 = vector.broadcast %73 : vector<16x1xf32> to vector<16x16xf32>
    %75 = arith.mulf %72, %74 : vector<16x16xf32>
    %c0_31 = arith.constant 0 : index
    %c0_32 = arith.constant 0 : index
    %c16 = arith.constant 16 : index
    %76 = vector.load %arg6[%c0_31, %c0_32, %c16] : memref<1x16x64xf32, #tpu.memory_space<vmem>>, vector<1x16x16xf32>
    %77 = vector.shape_cast %76 : vector<1x16x16xf32> to vector<16x16xf32>
    %78 = vector.shape_cast %75 : vector<16x16xf32> to vector<1x16x16xf32>
    tpu.vector_store %arg6[%c0_31, %c0_32, %c16], %78 {strides = array<i32>} : memref<1x16x64xf32, #tpu.memory_space<vmem>>, vector<1x16x16xf32>,
    %79 = vector.extract_strided_slice %7 {offsets = [2, 0], sizes = [1, 16], strides = [1, 1]} : vector<4x16xf32> to vector<1x16xf32>
    %80 = vector.extract_strided_slice %5 {offsets = [0, 2], sizes = [16, 1], strides = [1, 1]} : vector<16x4xf32> to vector<16x1xf32>
    %81 = vector.broadcast %79 : vector<1x16xf32> to vector<16x16xf32>
    %82 = vector.broadcast %80 : vector<16x1xf32> to vector<16x16xf32>
    %83 = arith.addf %81, %82 : vector<16x16xf32>
    %84 = vector.extract_strided_slice %14 {offsets = [0, 32], sizes = [16, 16], strides = [1, 1]} : vector<16x64xf32> to vector<16x16xf32>
    %85 = arith.addf %83, %84 : vector<16x16xf32>
    %cst_33 = arith.constant 0.000000e+00 : f32
    %86 = vector.broadcast %cst_33 : f32 to vector<16x16xf32>
    %87 = arith.cmpf ogt, %85, %86 : vector<16x16xf32>
    %cst_34 = arith.constant 2.000000e-01 : f32
    %88 = vector.broadcast %cst_34 : f32 to vector<16x16xf32>
    %89 = arith.mulf %88, %85 : vector<16x16xf32>
    %90 = arith.select %87, %85, %89 : vector<16x16xi1>, vector<16x16xf32>
    %cst_35 = arith.constant -1.000000e+30 : f32
    %91 = vector.broadcast %cst_35 : f32 to vector<16x16xf32>
    %92 = arith.select %12, %90, %91 : vector<16x16xi1>, vector<16x16xf32>
    %cst_36 = arith.constant dense<0xFF800000> : vector<16xf32>
    %93 = vector.multi_reduction <maximumf>, %92, %cst_36 [1] : vector<16x16xf32> to vector<16xf32>
    %94 = vector.shape_cast %93 : vector<16xf32> to vector<16x1xf32>
    %95 = vector.broadcast %94 : vector<16x1xf32> to vector<16x16xf32>
    %96 = arith.subf %92, %95 : vector<16x16xf32>
    %97 = math.exp %96 : vector<16x16xf32>
    %cst_37 = arith.constant dense<0.000000e+00> : vector<16xf32>
    %98 = vector.multi_reduction <add>, %97, %cst_37 [1] : vector<16x16xf32> to vector<16xf32>
    %99 = vector.shape_cast %98 : vector<16xf32> to vector<16x1xf32>
    %cst_38 = arith.constant 1.000000e-30 : f32
    %100 = vector.broadcast %cst_38 : f32 to vector<16x1xf32>
    %101 = arith.maximumf %99, %100 : vector<16x1xf32>
    %102 = arith.truncf %97 : vector<16x16xf32> to vector<16x16xbf16>
    %103 = vector.extract_strided_slice %8 {offsets = [0, 32], sizes = [16, 16], strides = [1, 1]} : vector<16x64xbf16> to vector<16x16xbf16>
    %cst_39 = arith.constant dense<0.000000e+00> : vector<16x16xf32>
    %104 = tpu.matmul %102, %103, %cst_39 {dimension_numbers = #tpu.dot_dimension_numbers<[1], [0], [0], [1], [0, 0, 1, 1], [], []>} : vector<16x16xbf16>, vector<16x16xbf16>, vector<16x16xf32> -> vector<16x16xf32>
    %105 = tpu.reciprocal %101 {approx = true} : vector<16x1xf32> -> vector<16x1xf32>
    %106 = vector.broadcast %105 : vector<16x1xf32> to vector<16x16xf32>
    %107 = arith.mulf %104, %106 : vector<16x16xf32>
    %c0_40 = arith.constant 0 : index
    %c0_41 = arith.constant 0 : index
    %c32 = arith.constant 32 : index
    %108 = vector.load %arg6[%c0_40, %c0_41, %c32] : memref<1x16x64xf32, #tpu.memory_space<vmem>>, vector<1x16x16xf32>
    %109 = vector.shape_cast %108 : vector<1x16x16xf32> to vector<16x16xf32>
    %110 = vector.shape_cast %107 : vector<16x16xf32> to vector<1x16x16xf32>
    tpu.vector_store %arg6[%c0_40, %c0_41, %c32], %110 {strides = array<i32>} : memref<1x16x64xf32, #tpu.memory_space<vmem>>, vector<1x16x16xf32>,
    %111 = vector.extract_strided_slice %7 {offsets = [3, 0], sizes = [1, 16], strides = [1, 1]} : vector<4x16xf32> to vector<1x16xf32>
    %112 = vector.extract_strided_slice %5 {offsets = [0, 3], sizes = [16, 1], strides = [1, 1]} : vector<16x4xf32> to vector<16x1xf32>
    %113 = vector.broadcast %111 : vector<1x16xf32> to vector<16x16xf32>
    %114 = vector.broadcast %112 : vector<16x1xf32> to vector<16x16xf32>
    %115 = arith.addf %113, %114 : vector<16x16xf32>
    %116 = vector.extract_strided_slice %14 {offsets = [0, 48], sizes = [16, 16], strides = [1, 1]} : vector<16x64xf32> to vector<16x16xf32>
    %117 = arith.addf %115, %116 : vector<16x16xf32>
    %cst_42 = arith.constant 0.000000e+00 : f32
    %118 = vector.broadcast %cst_42 : f32 to vector<16x16xf32>
    %119 = arith.cmpf ogt, %117, %118 : vector<16x16xf32>
    %cst_43 = arith.constant 2.000000e-01 : f32
    %120 = vector.broadcast %cst_43 : f32 to vector<16x16xf32>
    %121 = arith.mulf %120, %117 : vector<16x16xf32>
    %122 = arith.select %119, %117, %121 : vector<16x16xi1>, vector<16x16xf32>
    %cst_44 = arith.constant -1.000000e+30 : f32
    %123 = vector.broadcast %cst_44 : f32 to vector<16x16xf32>
    %124 = arith.select %12, %122, %123 : vector<16x16xi1>, vector<16x16xf32>
    %cst_45 = arith.constant dense<0xFF800000> : vector<16xf32>
    %125 = vector.multi_reduction <maximumf>, %124, %cst_45 [1] : vector<16x16xf32> to vector<16xf32>
    %126 = vector.shape_cast %125 : vector<16xf32> to vector<16x1xf32>
    %127 = vector.broadcast %126 : vector<16x1xf32> to vector<16x16xf32>
    %128 = arith.subf %124, %127 : vector<16x16xf32>
    %129 = math.exp %128 : vector<16x16xf32>
    %cst_46 = arith.constant dense<0.000000e+00> : vector<16xf32>
    %130 = vector.multi_reduction <add>, %129, %cst_46 [1] : vector<16x16xf32> to vector<16xf32>
    %131 = vector.shape_cast %130 : vector<16xf32> to vector<16x1xf32>
    %cst_47 = arith.constant 1.000000e-30 : f32
    %132 = vector.broadcast %cst_47 : f32 to vector<16x1xf32>
    %133 = arith.maximumf %131, %132 : vector<16x1xf32>
    %134 = arith.truncf %129 : vector<16x16xf32> to vector<16x16xbf16>
    %135 = vector.extract_strided_slice %8 {offsets = [0, 48], sizes = [16, 16], strides = [1, 1]} : vector<16x64xbf16> to vector<16x16xbf16>
    %cst_48 = arith.constant dense<0.000000e+00> : vector<16x16xf32>
    %136 = tpu.matmul %134, %135, %cst_48 {dimension_numbers = #tpu.dot_dimension_numbers<[1], [0], [0], [1], [0, 0, 1, 1], [], []>} : vector<16x16xbf16>, vector<16x16xbf16>, vector<16x16xf32> -> vector<16x16xf32>
    %137 = tpu.reciprocal %133 {approx = true} : vector<16x1xf32> -> vector<16x1xf32>
    %138 = vector.broadcast %137 : vector<16x1xf32> to vector<16x16xf32>
    %139 = arith.mulf %136, %138 : vector<16x16xf32>
    %c0_49 = arith.constant 0 : index
    %c0_50 = arith.constant 0 : index
    %c48 = arith.constant 48 : index
    %140 = vector.load %arg6[%c0_49, %c0_50, %c48] : memref<1x16x64xf32, #tpu.memory_space<vmem>>, vector<1x16x16xf32>
    %141 = vector.shape_cast %140 : vector<1x16x16xf32> to vector<16x16xf32>
    %142 = vector.shape_cast %139 : vector<16x16xf32> to vector<1x16x16xf32>
    tpu.vector_store %arg6[%c0_49, %c0_50, %c48], %142 {strides = array<i32>} : memref<1x16x64xf32, #tpu.memory_space<vmem>>, vector<1x16x16xf32>,
    return
  }
  func.func @transform_0(%arg0: i32) -> (i32, i32, i32) {
    %c0_i32 = arith.constant 0 : i32
    %c0_i32_0 = arith.constant 0 : i32
    %c0_i32_1 = arith.constant 0 : i32
    return %arg0, %c0_i32, %c0_i32_0 : i32, i32, i32
  }
  func.func @transform_1(%arg0: i32) -> (i32, i32) {
    %c0_i32 = arith.constant 0 : i32
    %c0_i32_0 = arith.constant 0 : i32
    %c0_i32_1 = arith.constant 0 : i32
    return %c0_i32, %c0_i32_0 : i32, i32
  }
  func.func @transform_2(%arg0: i32) -> (i32, i32) {
    %c0_i32 = arith.constant 0 : i32
    %c0_i32_0 = arith.constant 0 : i32
    %c0_i32_1 = arith.constant 0 : i32
    return %c0_i32, %c0_i32_0 : i32, i32
  }
  func.func @transform_3(%arg0: i32) -> (i32, i32, i32) {
    %c0_i32 = arith.constant 0 : i32
    %c0_i32_0 = arith.constant 0 : i32
    %c0_i32_1 = arith.constant 0 : i32
    return %arg0, %c0_i32, %c0_i32_0 : i32, i32, i32
  }
  func.func @transform_4(%arg0: i32) -> (i32, i32, i32) {
    %c0_i32 = arith.constant 0 : i32
    %c0_i32_0 = arith.constant 0 : i32
    %c0_i32_1 = arith.constant 0 : i32
    return %arg0, %c0_i32, %c0_i32_0 : i32, i32, i32
  }
  func.func @transform_5(%arg0: i32) -> (i32, i32, i32) {
    %c0_i32 = arith.constant 0 : i32
    %c0_i32_0 = arith.constant 0 : i32
    %c0_i32_1 = arith.constant 0 : i32
    return %arg0, %c0_i32, %c0_i32_0 : i32, i32, i32
  }
}

</mosaic_0001>

<bundles_post_ra>
// kernel: tpu_custom_call.1
= control target key start
LH: loop header
LB: loop body
LE: loop exit
PB: predicated region body
PF: predicated region fallthrough
CT: control target
= control target key end

     0   :  { %s1660_s0 = inlined_call_operand.hbm [shape: bf16[2,16,16], index: 0, kind: input, shape index: {}]   ;;  %s1661_s1 = inlined_call_operand.hbm [shape: bf16[16,128], index: 1, kind: input, shape index: {}]   ;;  %s1662_s2 = inlined_call_operand.hbm [shape: bf16[4,16], index: 2, kind: input, shape index: {}]   ;;  %s1663_s3 = inlined_call_operand.hbm [shape: f32[2,16,64], index: 3, kind: input, shape index: {}]   ;;  %s1664_s4 = inlined_call_operand.hbm [shape: f32[2,16,16], index: 4, kind: input, shape index: {}]   ;;  %s1665_s5 = inlined_call_operand.hbm [shape: f32[2,16,64], index: 5, kind: output, shape index: {}]  }
   0x1   :  { %1676 = sst [smem:[#allocation20_spill]] %s1661_s1 }
   0x2   :  { %1677 = sst [smem:[#allocation21_spill]] %s1663_s3 }
   0x3   :  { %10 = vsyncpa [#allocation3], 0 }
   0x4   :  { %12 = vsyncpa [#allocation3 + $0x1], 0 }
   0x5   :  { %13 = vsyncpa [#allocation6], 0 }
   0x6   :  { %14 = vsyncpa [#allocation9], 0 }
   0x7   :  { %16 = vsyncpa [#allocation9 + $0x1], 0 }
   0x8   :  { %17 = vsyncpa [#allocation4], 0 }
   0x9   :  { %19 = vsyncpa [#allocation4 + $0x1], 0  ;;  %s1344_s18 = smov 0   ;;  %s1346_s19 = smov 0  }
   0xa   :  { %s1348_s20 = smov 0   ;;  %s1350_s21 = smov 0  }
   0xb LB: > { %1678 = sst [smem:[#allocation16_spill]] %s1290_s20  ;;  %s1365_s22 = sadd.s32 4294967295, %s1294_s21   ;;  %s1294_s21 = sphi %s1350_s21, %s1699_s21   ;;  %s1290_s20 = sphi %s1348_s20, %s1701_s20   ;;  %s1286_s19 = sphi %s1346_s19, %s1703_s19   ;;  %s1282_s18 = sphi %s1344_s18, %s1702_s18  }
   0xc   : > { %s891_s23 = sadd.s32 4294967294, %s1294_s21   ;;  %p45_p0 = scmp.ne.s32.totalorder %s1286_s19, %s1282_s18 }
   0xd   : > { %p1669_p1 = scmp.eq.s32.totalorder %s1365_s22, 0  ;;  %p163_p2 = scmp.eq.s32.totalorder %s1365_s22, 1 }
   0xe   : > { %p169_p3 = scmp.eq.s32.totalorder %s891_s23, 1  ;;  %p892_p5 = scmp.ge.s32.totalorder %s1294_s21, 1 }
   0xf   : > { %p1374_p4 = por %p1669_p1, %p45_p0  ;;  %p176_p7 = scmp.lt.s32.totalorder %s1294_s21, 3 }
  0x10   : > { %p1379_p6 = por %p169_p3, %p45_p0  ;;  %s1682_s1 = sld [smem:[#allocation20_spill]] }
  0x11   : > { %p1387_p8 = pnand %p892_p5, %p176_p7  ;;  %s1296_s30 = smov [#allocation5]  }
  0x12   : > { %s1680_s25 = scalar_select %p1379_p6, 1, 0 }
  0x13   : > { %p953_p9 = pneg %p1387_p8  ;;  %s189_s6 = sshll.u32 %s1296_s30, 4  ;;  %s190_s6 = int_to_ptr.vmem [resolvable:$true] %s189_s6 }
  0x14   : > { %1681 = sst [smem:[#allocation17_spill]] %s1680_s25  ;;  %s1401_s8 = sadd.s32 1, %s1294_s21  }
  0x15   : > { %p1395_p10 = pnand %p953_p9, %p1669_p1  ;;  %1685 = sst [smem:[#allocation18_spill]] %s1401_s8 }
  0x16   : > { %s187_s28 = sshll.u32 %s1682_s1, 4  ;;  %s1666_s9 = smov 64   ;;  %s188_s28 = int_to_ptr.hbm [resolvable:$true] %s187_s28 }
  0x17   : > { %s1667_s10 = smov 4   ;;  %s29_s11 = ssub.s32 %s1294_s21, %s1401_s8 }
  0x18   : > { %956 = dma.hbm_to_vmem [thread:$0]  (!%p1395_p10), %s188_s28, 128, %s190_s6, [#allocation6], %s1666_s9, %s1666_s9, %s1667_s10  }
  0x19   : > { %s32_s12 = sadd.s32 1, %s1290_s20  ;;  %p30_p12 = scmp.eq.s32.totalorder %s29_s11, 0 }
  0x1a   : > { %p39_p13 = scmp.ne.s32.totalorder %s1290_s20, %s1286_s19  ;;  %p40_p0 = scmp.eq.s32.totalorder %s1294_s21, 0 }
  0x1b   : > { %p976_p3 = scmp.lt.s32.totalorder %s1294_s21, 2  ;;  %s1425_s15 = sand.u32 1, %s1290_s20  }
  0x1c   : > { %s1416_s13 = scalar_select %p30_p12, %s1290_s20, %s32_s12  }
  0x1d   : > { %p41_p5 = por %p40_p0, %p39_p13  ;;  %p1420_p7 = por %p163_p2, %p39_p13 }
  0x1e   : > { %1686 = sst [smem:[#allocation19_spill]] %s1416_s13  ;;  %s237_s16 = sand.u32 1, %s1294_s21  }
  0x1f   : > { %p1428_p9 = pnand %p976_p3, %p41_p5  ;;  %s1668_s23 = sshll.u32 %s1425_s15, 4 }
  0x20   : > { %s932_s26 = sshll.u32 %s1294_s21, 4  ;;  %s1689_s3 = sld [smem:[#allocation21_spill]] }
  0x21   : > { %s241_s6 = scalar_lea.vmem [#allocation8], %s1668_s23  ;;  %s1439_s9 = scalar_lea.sflag [#allocation9], %s237_s16 }
  0x22   : > { %s249_s11 = sshll.u32 %s241_s6, 4  ;;  %p1104_p12 = pneg %p1428_p9  ;;  %s250_s11 = int_to_ptr.vmem [resolvable:$true] %s249_s11 }
  0x26   : > { %s246_s30 = scalar_lea.hbm %s1689_s3, %s932_s26  ;;  %s1107_s23 = scalar_lea.hbm %s1689_s3, 32 }
  0x27   : > { %s247_s12 = sshll.u32 %s246_s30, 4  ;;  %s248_s12 = int_to_ptr.hbm [resolvable:$true] %s247_s12 }
  0x28   : > { %s1100_s10 = sshra.s32 %s248_s12, 4  ;;  %s1101_s10 = int_to_ptr.hbm [resolvable:$true] %s1100_s10 }
  0x29   : > { %s1102_s1 = scalar_lea.hbm %s1101_s10, 16  ;;  %p1108_p3 = scmp.lt.s32.totalorder %s1101_s10, %s1689_s3 }
  0x2a   : > { %p1103_p2 = scmp.ne.s32.totalorder %s1101_s10, %s1102_s1  ;;  %p1109_p5 = scmp.lt.s32.totalorder %s1107_s23, %s1102_s1 }
  0x2c   : > { %p1105_p13 = pnand %p1104_p12, %p1103_p2  ;;  %p1110_p11 = por %p1109_p5, %p1108_p3 }
  0x2e   : > { %p1106_p0 = pneg %p1105_p13 }
  0x30   : > { %p1111_p1 = pnand %p1110_p11, %p1106_p0 }
  0x32   : > { %1114 = shalt.err (!%p1111_p1)
}
  0x33   : > { %s1674_s16 = smov 128   ;;  %s1675_s13 = smov 8  }
  0x34   : > { %966 = dma.hbm_to_vmem [thread:$0]  (!%p1428_p9), %s248_s12, 256, %s250_s11, %s1439_s9, %s1674_s16, %s1674_s16, %s1675_s13  }
  0x35   : > { %s268_s1 = scalar_lea.hbm %s1664_s4, %s932_s26  ;;  %s1690_s10 = sshll.u32 %s1425_s15, 4 }
  0x36   : > { %s263_s23 = scalar_lea.vmem [#allocation10], %s1690_s10  ;;  %s269_s30 = sshll.u32 %s268_s1, 4  ;;  %s1465_s30 = int_to_ptr.hbm [resolvable:$true] %s269_s30 }
  0x37   : > { %s271_s6 = sshll.u32 %s263_s23, 4  ;;  %s202_s8 = sshll.u32 %s1662_s2, 4  ;;  %s1463_s6 = int_to_ptr.vmem [resolvable:$true] %s271_s6  ;;  %s203_s8 = int_to_ptr.hbm [resolvable:$true] %s202_s8 }
  0x38   : > { %s1301_s25 = smov [#allocation7]   ;;  %s896_s12 = sshll.u32 %s1425_s15, 3 }
  0x39   : > { %s204_s11 = sshll.u32 %s1301_s25, 4  ;;  %s931_s26 = sshll.u32 %s1294_s21, 3  ;;  %s205_s11 = int_to_ptr.vmem [resolvable:$true] %s204_s11 }
  0x3a   : > { %959 = dma.hbm_to_vmem [thread:$0]  (!%p1395_p10), %s203_s8, 32, %s205_s11, [#allocation6]  }
  0x3b   : > { %s224_s1 = scalar_lea.hbm %s1660_s0, %s931_s26  ;;  %s219_s10 = scalar_lea.vmem [#allocation2], %s896_s12 }
  0x3c   : > { %s227_s23 = sshll.u32 %s219_s10, 4  ;;  %s225_s16 = sshll.u32 %s224_s1, 4  ;;  %s228_s23 = int_to_ptr.vmem [resolvable:$true] %s227_s23  ;;  %s226_s16 = int_to_ptr.hbm [resolvable:$true] %s225_s16 }
  0x3d   : > { %s216_s3 = scalar_lea.sflag [#allocation3], %s1425_s15  ;;  %s1160_s20 = sshra.s32 %s226_s16, 4  ;;  %s1161_s20 = int_to_ptr.hbm [resolvable:$true] %s1160_s20 }
  0x3e   : > { %s1162_s13 = scalar_lea.hbm %s1161_s20, 8  ;;  %s1167_s8 = scalar_lea.hbm %s1660_s0, 16 }
  0x3f   : > { %p1163_p1 = scmp.ne.s32.totalorder %s1161_s20, %s1162_s13  ;;  %p1168_p10 = scmp.lt.s32.totalorder %s1161_s20, %s1660_s0 }
  0x40   : > { %p1169_p13 = scmp.lt.s32.totalorder %s1167_s8, %s1162_s13 }
  0x41   : > { %p1165_p11 = pnand %p1163_p1, %p1104_p12 }
  0x42   : > { %p1170_p0 = por %p1169_p13, %p1168_p10 }
  0x43   : > { %p1166_p2 = pneg %p1165_p11 }
  0x45   : > { %p1171_p3 = pnand %p1170_p0, %p1166_p2 }
  0x47   : > { %1174 = shalt.err (!%p1171_p3)
}
  0x48   : > { %s1691_s15 = smov 4   ;;  %s1692_s12 = smov 64  }
  0x49   : > { %963 = dma.hbm_to_vmem [thread:$0]  (!%p1428_p9), %s226_s16, 128, %s228_s23, %s216_s3, %s1692_s12, %s1692_s12, %s1691_s15  }
  0x4a   : > { %s1190_s27 = sshra.s32 %s1465_s30, 4  ;;  %s1197_s10 = scalar_lea.hbm %s1664_s4, 32  ;;  %s1191_s27 = int_to_ptr.hbm [resolvable:$true] %s1190_s27 }
  0x4b   : > { %s1192_s28 = scalar_lea.hbm %s1191_s27, 16  ;;  %p1198_p2 = scmp.lt.s32.totalorder %s1191_s27, %s1664_s4 }
  0x4c   : > { %p1193_p5 = scmp.ne.s32.totalorder %s1191_s27, %s1192_s28  ;;  %p1199_p10 = scmp.lt.s32.totalorder %s1197_s10, %s1192_s28 }
  0x4e   : > { %p1195_p1 = pnand %p1193_p5, %p1104_p12  ;;  %p1200_p13 = por %p1199_p10, %p1198_p2 }
  0x50   : > { %p1196_p11 = pneg %p1195_p1 }
  0x52   : > { %p1201_p0 = pnand %p1200_p13, %p1196_p11 }
  0x54   : > { %1204 = shalt.err (!%p1201_p0)
}
  0x55   : > { %s1693_s16 = smov 8   ;;  %s1694_s23 = smov 128  }
  0x56   : > { %969 = dma.hbm_to_vmem [thread:$0]  (!%p1428_p9), %s1465_s30, 256, %s1463_s6, %s1439_s9, %s1694_s23, %s1694_s23, %s1693_s16  }
  0x57   : > { %283 = sbr.rel (%p1387_p8) target bundleno = 786 (0x312), region = 40  ;;  %s1513_s3 = sand.u32 (!%p1387_p8), 1, %s1286_s19  }
  0x58   : > { %s906_s7 = sshll.u32 (!%p1387_p8), %s1513_s3, 3  ;;  %s286_s8 = scalar_lea.sflag (!%p1387_p8), [#allocation3], %s1513_s3 }
  0x59   : > { %s289_s11 = scalar_lea.vmem (!%p1387_p8), [#allocation2], %s906_s7 }
  0x5c   : > { %1265 = dma.done.wait (%p1374_p4), %s286_s8, 128  }
  0x5d   : > { %1267 = vsyncadd (%p1374_p4), %s286_s8, 4294967168  ;;  %p1695_p12 = scmp.eq.s32.totalorder %s1365_s22, 0 }
  0x5f   : > { %1269 = dma.done.wait (%p1695_p12), [#allocation6], 160   ;;  %p1696_p9 = pmov %p1695_p12 }
  0x60   : > { %s305_s29 = sand.u32 1, %s1365_s22   ;;  %s1527_s9 = sshll.u32 %s1513_s3, 4 }
  0x61   : > { %1271 = vsyncadd (%p1696_p9), [#allocation6], 4294967136  ;;  %s306_s17 = scalar_lea.sflag [#allocation9], %s305_s29  ;;  %s309_s6 = scalar_lea.vmem [#allocation8], %s1527_s9 }
  0x62   : > { %1273 = dma.done.wait (%p1374_p4), %s306_s17, 512  }
  0x63   : > { %1275 = vsyncadd (%p1374_p4), %s306_s17, 4294966784  ;;  %v1302_v0 = vmov 66   ;;  %v1303_v1 = vmov 65   ;;  %v1304_v2 = vmov 64   ;;  %v935_v3 = vld [vmem:[#allocation5] sm:$0xff]  ;;  %v934_v4 = vld [vmem:[%s289_s11] sm:$0xff] }
  0x64   : > { %1033 = vset.pattern.permute.xlu2 %v1302_v0  ;;  %1031 = vset.pattern.permute.xlu1 %v1303_v1  ;;  %vm373_vm0 = vcmask 130048   ;;  %v414_v5 = vld [vmem:[%s309_s6] sm:$0xff]  ;;  %v1534_v6 = vld [vmem:[%s309_s6 + $0x8] sm:$0xff]  ;;  %s1305_s30 = smov 112   ;;  %s1306_s24 = smov 80   ;;  %v1308_v14 = vmov 67  }
  0x65   : > { %1030 = vset.pattern.permute.xlu0 %v1304_v2  ;;  %384 = vmatpush.bf16.msra.mxu0 %v935_v3  ;;  %v375_v7 = vsel %vm373_vm0, %v934_v4, 0  ;;  %v391_v8 = vld [vmem:[#allocation7] sm:$0x3]  ;;  %s1307_s26 = smov 96   ;;  %s319_s15 = scalar_lea.vmem [#allocation10], %s1527_s9  ;;  %vm571_vm11 = vcmask 261248  }
  0x66   : > { %502 = vrot.lane.b32.xlu2 %v414_v5, %s1305_s30  ;;  %402 = vmatpush.bf16.xpose.msra.mxu1 %v375_v7  ;;  %v410_v37 = vld [vmem:[%s319_s15] sm:$0xff]  ;;  %v411_v1 = vld [vmem:[%s319_s15 + $0x8] sm:$0xff]  ;;  %s1612_s12 = scalar_lea.vmem [#allocation11], %s1527_s9  ;;  %s1309_s27 = smov 16   ;;  %vm654_vm12 = vcmask 392448   ;;  %vm737_vm13 = vcmask 523648  }
  0x67   : > { %670 = vrot.lane.b32.xlu1 %v1534_v6, %s1306_s24  ;;  %vm412_vm3 = vcmp.gt.f32.partialorder %v410_v37, 0.0  ;;  %vm413_vm7 = vcmp.gt.f32.partialorder %v411_v1, 0.0  ;;  %s1310_s28 = smov 32   ;;  %s1311_s13 = smov 48  }
  0x68   : > { %920 = vmatmul.msk.bf16.vlgmr.msra.gmra.mxu0 %vm373_vm0, %v934_v4  ;;  %s936_s1 = sshll.u32 %s1365_s22, 4  ;;  %s753_s16 = sshll.u32 %s1612_s12, 4  ;;  %s754_s16 = int_to_ptr.vmem [resolvable:$true] %s753_s16 }
  0x69   : > { %s752_s25 = scalar_lea.hbm %s1665_s5, %s936_s1  ;;  %s741_s22 = scalar_lea.sflag [#allocation4], %s1513_s3 }
  0x6a   : > { %s755_s23 = sshll.u32 %s752_s25, 4  ;;  %s1240_s9 = scalar_lea.hbm %s1665_s5, 32  ;;  %s756_s23 = int_to_ptr.hbm [resolvable:$true] %s755_s23 }
  0x6b   : > { %s1234_s7 = sshra.s32 %s756_s23, 4  ;;  %s1235_s7 = int_to_ptr.hbm [resolvable:$true] %s1234_s7 }
  0x6c   : > { %s1236_s8 = scalar_lea.hbm %s1235_s7, 16  ;;  %p1241_p5 = scmp.lt.s32.totalorder %s1235_s7, %s1665_s5 }
  0x6d   : > { %921 = vmatmul.msk.bf16.vlgmr.msra.gmra.mxu1 %vm373_vm0, %v391_v8  ;;  %p1237_p4 = scmp.ne.s32.totalorder %s1235_s7, %s1236_s8  ;;  %p1242_p1 = scmp.lt.s32.totalorder %s1240_s9, %s1236_s8 }
  0x6e   : > { %504 = vrot.lane.b32.xlu2 %v1534_v6, %s1305_s30 }
  0x6f   : > { %585 = vrot.lane.b32.xlu1 %v414_v5, %s1307_s26  ;;  %p1238_p8 = pnand %p1237_p4, %p1420_p7  ;;  %p1243_p11 = por %p1242_p1, %p1241_p5 }
  0x71   : > { %p1239_p3 = pneg %p1238_p8 }
  0x73   : > { %p1244_p2 = pnand %p1243_p11, %p1239_p3 }
  0x76   : > { %668 = vrot.lane.b32.xlu2 %v414_v5, %s1306_s24 }
  0x7e   : > { %587 = vrot.lane.b32.xlu2 %v1534_v6, %s1307_s26 }
  0xc0   : > { %v503_v19 = vpop.permute.xlu2 %502 }
  0xc8   : > { %v505_v20 = vpop.permute.xlu2 %504 }
  0xd0   : > { %v669_v21 = vpop.permute.xlu2 %668 }
  0xd8   : > { %v1555_v23 = vpop.permute.xlu2 %587 }
  0xd9   : > { %v1553_v22 = vpop.permute.xlu1 %670 }
  0xe1   : > { %v586_v24 = vpop.permute.xlu1 %585 }
  0xe5   : > { %v386_v9 = vpop.f32.mrf.mxu0 }
  0xe6   : > { %576 = vperm.xlu2 %1033, %v386_v9   ;;  %491 = vperm.xlu1 %1031, %v386_v9   ;;  %v408_v11 = vpack.c.bf16 %v386_v9, %v386_v9 }
  0xe7   : > { %419 = vperm.xlu0 %1030, %v386_v9  }
  0xe8   : > { %v462_v15 = vunpack.c.l.b16 %v408_v11 }
  0xea   : > { %v1548_v10 = vpop.f32.mrf.mxu1 }
  0xeb   : > { %v574_v25 = vperm.slane %v1548_v10, 2  ;;  %v489_v27 = vperm.slane %v1548_v10, 1  ;;  %v416_v28 = vperm.slane %v1548_v10, 0  ;;  %v657_v41 = vperm.slane %v1548_v10, 3 }
  0xed   : > { %v388_v12 = vpop.f32.mrf.mxu0 }
  0xee   : > { %v409_v13 = vpack.c.bf16 %v388_v12, %v388_v12  ;;  %495 = vperm.xlu1 %1031, %v388_v12  }
  0xef   : > { %1032 = vset.pattern.permute.xlu0 %v1308_v14 }
  0xf0   : > { %v463_v16 = vunpack.c.l.b16 %v409_v13  ;;  %659 = vperm.xlu0 %1032, %v386_v9  }
  0xf2   : > { %v1550_v17 = vpack.c.b16 %v463_v16, %v462_v15  ;;  %v406_v18 = vpop.f32.mrf.mxu1 }
  0xf4   : > { %476 = vmatpush.bf16.msra.mxu2 %v1550_v17 }
  0xf6   : > { %1035 = vset.pattern.permute.xlu1 %v1308_v14 }
  0xf7   : > { %663 = vperm.xlu1 %1035, %v388_v12  }
  0xf8   : > { %1034 = vset.pattern.permute.xlu0 %v1304_v2 }
  0xf9   : > { %424 = vperm.xlu0 %1034, %v388_v12  }
 0x101   : > { %1036 = vset.pattern.permute.xlu0 %v1302_v0 }
 0x102   : > { %580 = vperm.xlu0 %1036, %v388_v12  }
 0x10a   : > { %1037 = vset.pattern.permute.xlu0 %v1308_v14 }
 0x140   : > { %v577_v26 = vpop.permute.xlu2 %576 }
 0x141   : > { %v583_v29 = vadd.f32 %v577_v26, %v574_v25 }
 0x143   : > { %v591_v34 = vadd.f32 %v586_v24, %v583_v29 }
 0x145   : > { %v595_v40 = vmul.f32 0.2, %v591_v34  ;;  %vm593_vm4 = vcmp.gt.f32.partialorder %v591_v34, 0.0 }
 0x147   : > { %v597_v50 = vsel %vm593_vm4, %v591_v34, %v595_v40 }
 0x148   : > { %v599_v53 = vsel %vm412_vm3, %v597_v50, -1e+30 }
 0x149   : > { %v601_v55 = vsel %vm373_vm0, %v599_v53, -inf }
 0x158   : > { %v492_v30 = vpop.permute.xlu1 %491 }
 0x159   : > { %v498_v31 = vadd.f32 %v492_v30, %v489_v27  ;;  %v420_v32 = vpop.permute.xlu0 %419 }
 0x15a   : > { %v427_v33 = vadd.f32 %v420_v32, %v416_v28 }
 0x15b   : > { %v508_v35 = vadd.f32 %v503_v19, %v498_v31 }
 0x15c   : > { %v429_v36 = vadd.f32 %v427_v33, %v414_v5 }
 0x15d   : > { %vm510_vm1 = vcmp.gt.f32.partialorder %v508_v35, 0.0  ;;  %v512_v38 = vmul.f32 0.2, %v508_v35 }
 0x15e   : > { %vm431_vm2 = vcmp.gt.f32.partialorder %v429_v36, 0.0  ;;  %v433_v39 = vmul.f32 0.2, %v429_v36 }
 0x15f   : > { %v514_v42 = vsel %vm510_vm1, %v508_v35, %v512_v38 }
 0x160   : > { %v1565_v43 = vsel %vm412_vm3, %v514_v42, -1e+30  ;;  %v435_v44 = vsel %vm431_vm2, %v429_v36, %v433_v39  ;;  %v496_v51 = vpop.permute.xlu1 %495 }
 0x161   : > { %v518_v45 = vsel %vm373_vm0, %v1565_v43, -inf  ;;  %v1570_v46 = vsel %vm412_vm3, %v435_v44, -1e+30  ;;  %v499_v57 = vadd.f32 %v496_v51, %v489_v27 }
 0x162   : > { %v660_v47 = vpop.permute.xlu0 %659  ;;  %519 = vmax.xlane.f32.xlu0 %v518_v45  ;;  %v439_v48 = vsel %vm373_vm0, %v1570_v46, -inf }
 0x163   : > { %v666_v49 = vadd.f32 %v660_v47, %v657_v41  ;;  %440 = vmax.xlane.f32.xlu1 %v439_v48  ;;  %v509_v62 = vadd.f32 %v505_v20, %v499_v57 }
 0x165   : > { %v674_v52 = vadd.f32 %v669_v21, %v666_v49  ;;  %v513_v5 = vmul.f32 0.2, %v509_v62  ;;  %vm511_vm8 = vcmp.gt.f32.partialorder %v509_v62, 0.0 }
 0x167   : > { %vm676_vm5 = vcmp.gt.f32.partialorder %v674_v52, 0.0  ;;  %v678_v54 = vmul.f32 0.2, %v674_v52 }
 0x169   : > { %v680_v56 = vsel %vm676_vm5, %v674_v52, %v678_v54  ;;  %v664_v0 = vpop.permute.xlu1 %663 }
 0x16a   : > { %602 = vmax.xlane.f32.xlu0 %v601_v55  ;;  %v682_v58 = vsel %vm412_vm3, %v680_v56, -1e+30  ;;  %v667_v3 = vadd.f32 %v664_v0, %v657_v41 }
 0x16b   : > { %v425_v59 = vpop.permute.xlu0 %424  ;;  %v684_v60 = vsel %vm373_vm0, %v682_v58, -inf }
 0x16c   : > { %v428_v61 = vadd.f32 %v425_v59, %v416_v28  ;;  %685 = vmax.xlane.f32.xlu1 %v684_v60  ;;  %v675_v11 = vadd.f32 %v1553_v22, %v667_v3 }
 0x16e   : > { %v430_v63 = vadd.f32 %v428_v61, %v1534_v6  ;;  %v515_v6 = vsel %vm511_vm8, %v509_v62, %v513_v5  ;;  %v679_v15 = vmul.f32 0.2, %v675_v11  ;;  %vm677_vm10 = vcmp.gt.f32.partialorder %v675_v11, 0.0 }
 0x16f   : > { %v517_v13 = vsel %vm413_vm7, %v515_v6, -1e+30 }
 0x170   : > { %vm432_vm6 = vcmp.gt.f32.partialorder %v430_v63, 0.0  ;;  %v434_v2 = vmul.f32 0.2, %v430_v63  ;;  %v521_v18 = vsel %vm373_vm0, %v517_v13, -inf  ;;  %v681_v21 = vsel %vm677_vm10, %v675_v11, %v679_v15 }
 0x171   : > { %v683_v22 = vsel %vm413_vm7, %v681_v21, -1e+30 }
 0x172   : > { %v436_v4 = vsel %vm432_vm6, %v430_v63, %v434_v2 }
 0x173   : > { %v438_v7 = vsel %vm413_vm7, %v436_v4, -1e+30 }
 0x174   : > { %v581_v8 = vpop.permute.xlu0 %580  ;;  %v442_v9 = vsel %vm373_vm0, %v438_v7, -inf }
 0x175   : > { %v584_v10 = vadd.f32 %v581_v8, %v574_v25  ;;  %443 = vmax.xlane.f32.xlu2 %v442_v9 }
 0x177   : > { %v592_v12 = vadd.f32 %v1555_v23, %v584_v10  ;;  %v687_v23 = vsel %vm373_vm0, %v683_v22, -inf }
 0x179   : > { %vm594_vm9 = vcmp.gt.f32.partialorder %v592_v12, 0.0  ;;  %v596_v14 = vmul.f32 0.2, %v592_v12 }
 0x17b   : > { %v598_v16 = vsel %vm594_vm9, %v592_v12, %v596_v14 }
 0x17c   : > { %v600_v19 = vsel %vm413_vm7, %v598_v16, -1e+30 }
 0x17d   : > { %522 = vmax.xlane.f32.xlu2 %v521_v18  ;;  %v604_v20 = vsel %vm373_vm0, %v600_v19, -inf }
 0x17e   : > { %605 = vmax.xlane.f32.xlu1 %v604_v20  ;;  %705 = vrot.lane.b32.xlu0 %v1550_v17, %s1306_s24 }
 0x185   : > { %688 = vmax.xlane.f32.xlu2 %v687_v23 }
 0x197   : > { %622 = vrot.lane.b32.xlu1 %v1550_v17, %s1307_s26 }
 0x19d   : > { %539 = vrot.lane.b32.xlu2 %v1550_v17, %s1305_s30 }
 0x1d5   : > { %v520_v24 = vpop.xlane.xlu0 %519 }
 0x1d6   : > { %v524_v25 = vsub.f32 %v1565_v43, %v520_v24  ;;  %v441_v26 = vpop.xlane.xlu1 %440 }
 0x1d7   : > { %v445_v36 = vsub.f32 %v1570_v46, %v441_v26 }
 0x1d8   : > { %v526_v27 = vmul.f32 1.442695, %v524_v25 }
 0x1d9   : > { %v447_v37 = vmul.f32 1.442695, %v445_v36 }
 0x1da   : > { %1038 = vpow2.f32 %v526_v27 }
 0x1dd   : > { %v603_v28 = vpop.xlane.xlu0 %602 }
 0x1de   : > { %v607_v29 = vsub.f32 %v599_v53, %v603_v28 }
 0x1df   : > { %v686_v30 = vpop.xlane.xlu1 %685 }
 0x1e0   : > { %v1039_v31 = vpop.eup %1038  ;;  %v609_v32 = vmul.f32 1.442695, %v607_v29  ;;  %v690_v33 = vsub.f32 %v682_v58, %v686_v30 }
 0x1e1   : > { %v530_v34 = vsel %vm373_vm0, %v1039_v31, 0.0 }
 0x1e2   : > { %1040 = vpow2.f32 %v609_v32  ;;  %v692_v35 = vmul.f32 1.442695, %v690_v33  ;;  %531 = vadd.xlane.f32.xlu0 %v530_v34 }
 0x1e4   : > { %1042 = vpow2.f32 %v692_v35 }
 0x1e5   : > { %1044 = vpow2.f32 %v447_v37 }
 0x1e8   : > { %v1041_v17 = vpop.eup %1040  ;;  %v444_v38 = vpop.xlane.xlu2 %443 }
 0x1e9   : > { %v446_v39 = vsub.f32 %v438_v7, %v444_v38  ;;  %v613_v40 = vsel %vm373_vm0, %v1041_v17, 0.0 }
 0x1ea   : > { %v1043_v41 = vpop.eup %1042  ;;  %614 = vadd.xlane.f32.xlu1 %v613_v40 }
 0x1eb   : > { %v449_v42 = vmul.f32 1.442695, %v446_v39  ;;  %v696_v43 = vsel %vm373_vm0, %v1043_v41, 0.0  ;;  %v1045_v46 = vpop.eup %1044 }
 0x1ec   : > { %697 = vadd.xlane.f32.xlu2 %v696_v43  ;;  %v451_v3 = vsel %vm373_vm0, %v1045_v46, 0.0 }
 0x1ed   : > { %1046 = vpow2.f32 %v449_v42 }
 0x1f0   : > { %v523_v44 = vpop.xlane.xlu2 %522  ;;  %v706_v45 = vpop.permute.xlu0 %705 }
 0x1f1   : > { %v525_v47 = vsub.f32 %v517_v13, %v523_v44  ;;  %v606_v48 = vpop.xlane.xlu1 %605  ;;  %718 = vmatpush.bf16.msrb.mxu2 %v706_v45 }
 0x1f2   : > { %v608_v49 = vsub.f32 %v600_v19, %v606_v48 }
 0x1f3   : > { %v1047_v50 = vpop.eup %1046  ;;  %v528_v51 = vmul.f32 1.442695, %v525_v47 }
 0x1f4   : > { %v611_v52 = vmul.f32 1.442695, %v608_v49  ;;  %v459_v53 = vpack.c.bf16 %v1047_v50, %v1045_v46  ;;  %v454_v1 = vsel %vm373_vm0, %v1047_v50, 0.0 }
 0x1f5   : > { %1048 = vpow2.f32 %v528_v51 }
 0x1f6   : > { %1050 = vpow2.f32 %v611_v52  ;;  %922 = vmatmul.msk.bf16.vlgmr.msra.gmra.mxu2 %vm373_vm0, %v459_v53 }
 0x1f8   : > { %v689_v54 = vpop.xlane.xlu2 %688 }
 0x1f9   : > { %v691_v55 = vsub.f32 %v683_v22, %v689_v54 }
 0x1fb   : > { %v1049_v56 = vpop.eup %1048  ;;  %v694_v57 = vmul.f32 1.442695, %v691_v55 }
 0x1fc   : > { %v1051_v58 = vpop.eup %1050  ;;  %v533_v59 = vsel %vm373_vm0, %v1049_v56, 0.0  ;;  %v538_v62 = vpack.c.bf16 %v1049_v56, %v1039_v31 }
 0x1fd   : > { %1052 = vpow2.f32 %v694_v57  ;;  %534 = vadd.xlane.f32.xlu2 %v533_v59  ;;  %v616_v60 = vsel %vm373_vm0, %v1051_v58, 0.0  ;;  %v621_v5 = vpack.c.bf16 %v1051_v58, %v1041_v17 }
 0x1fe   : > { %617 = vadd.xlane.f32.xlu0 %v616_v60 }
 0x200   : > { %v540_v61 = vpop.permute.xlu2 %539 }
 0x201   : > { %552 = vmatpush.bf16.msra.mxu3 %v540_v61 }
 0x203   : > { %v1053_v63 = vpop.eup %1052 }
 0x204   : > { %923 = vmatmul.msk.bf16.vlgmr.msra.gmra.mxu3 %vm373_vm0, %v538_v62  ;;  %v699_v0 = vsel %vm373_vm0, %v1053_v63, 0.0  ;;  %v704_v2 = vpack.c.bf16 %v1053_v63, %v1043_v41 }
 0x205   : > { %700 = vadd.xlane.f32.xlu1 %v699_v0  ;;  %455 = vadd.xlane.f32.xlu2 %v454_v1 }
 0x206   : > { %925 = vmatmul.msk.bf16.vlgmr.msrb.gmra.mxu2 %vm373_vm0, %v704_v2  ;;  %452 = vadd.xlane.f32.xlu0 %v451_v3 }
 0x209   : > { %v623_v4 = vpop.permute.xlu1 %622 }
 0x20a   : > { %635 = vmatpush.bf16.msrb.mxu0 %v623_v4 }
 0x20d   : > { %924 = vmatmul.msk.bf16.vlgmr.msrb.gmra.mxu0 %vm373_vm0, %v621_v5 }
 0x255   : > { %v532_v8 = vpop.xlane.xlu0 %531 }
 0x256   : > { %v536_v16 = vmax.f32 %v532_v8, 1e-30 }
 0x25d   : > { %v615_v15 = vpop.xlane.xlu1 %614 }
 0x25e   : > { %v619_v18 = vmax.f32 %v615_v15, 1e-30 }
 0x25f   : > { %v698_v7 = vpop.xlane.xlu2 %697 }
 0x260   : > { %v702_v23 = vmax.f32 %v698_v7, 1e-30 }
 0x270   : > { %v535_v9 = vpop.xlane.xlu2 %534 }
 0x271   : > { %v618_v10 = vpop.xlane.xlu0 %617  ;;  %v537_v26 = vmax.f32 %v535_v9, 1e-30 }
 0x272   : > { %v620_v35 = vmax.f32 %v618_v10, 1e-30 }
 0x278   : > { %v456_v11 = vpop.xlane.xlu2 %455  ;;  %v701_v24 = vpop.xlane.xlu1 %700 }
 0x279   : > { %v458_v6 = vmax.f32 %v456_v11, 1e-30  ;;  %v478_v12 = vpop.f32.mrf.mxu2  ;;  %v453_v13 = vpop.xlane.xlu0 %452  ;;  %v703_v28 = vmax.f32 %v701_v24, 1e-30 }
 0x27a   : > { %v457_v14 = vmax.f32 %v453_v13, 1e-30 }
 0x27b   : > { %1054 = vrcp.f32 %v458_v6 }
 0x27c   : > { %1056 = vrcp.f32 %v457_v14 }
 0x27d   : > { %1058 = vrcp.f32 %v536_v16 }
 0x27e   : > { %1060 = vrcp.f32 %v619_v18 }
 0x27f   : > { %1062 = vrcp.f32 %v702_v23 }
 0x280   : > { %1064 = vrcp.f32 %v537_v26 }
 0x281   : > { %v1055_v19 = vpop.eup %1054  ;;  %v480_v20 = vpop.f32.mrf.mxu2  ;;  %1066 = vrcp.f32 %v703_v28 }
 0x282   : > { %v486_v21 = vmul.f32 %v1055_v19, %v480_v20  ;;  %v1057_v22 = vpop.eup %1056  ;;  %1068 = vrcp.f32 %v620_v35 }
 0x283   : > { %v485_v25 = vmul.f32 %v1057_v22, %v478_v12  ;;  %v1059_v27 = vpop.eup %1058 }
 0x284   : > { %488 = vst.msk [vmem:[%s1612_s12 + $0x8] sm:$0xff] %vm373_vm0, %v486_v21  ;;  %v1061_v32 = vpop.eup %1060 }
 0x285   : > { %487 = vst.msk [vmem:[%s1612_s12] sm:$0xff] %vm373_vm0, %v485_v25  ;;  %v1063_v36 = vpop.eup %1062 }
 0x286   : > { %v1065_v17 = vpop.eup %1064 }
 0x287   : > { %v554_v29 = vpop.f32.mrf.mxu3  ;;  %v1067_v40 = vpop.eup %1066 }
 0x288   : > { %v561_v30 = vmul.f32 %v1059_v27, %v554_v29  ;;  %v1069_v44 = vpop.eup %1068 }
 0x289   : > { %v720_v31 = vpop.f32.mrf.mxu2 }
 0x28a   : > { %565 = vrot.lane.b32.xlu1 %v561_v30, %s1309_s27  ;;  %v637_v33 = vpop.f32.mrf.mxu0  ;;  %v727_v38 = vmul.f32 %v1063_v36, %v720_v31 }
 0x28b   : > { %v644_v34 = vmul.f32 %v1061_v32, %v637_v33 }
 0x28d   : > { %648 = vrot.lane.b32.xlu2 %v644_v34, %s1310_s28 }
 0x28f   : > { %v556_v37 = vpop.f32.mrf.mxu3 }
 0x290   : > { %v562_v39 = vmul.f32 %v1065_v17, %v556_v37 }
 0x291   : > { %v722_v41 = vpop.f32.mrf.mxu2 }
 0x292   : > { %v728_v42 = vmul.f32 %v1067_v40, %v722_v41  ;;  %731 = vrot.lane.b32.xlu1 %v727_v38, %s1311_s13  ;;  %567 = vrot.lane.b32.xlu0 %v562_v39, %s1309_s27  ;;  %v639_v43 = vpop.f32.mrf.mxu0 }
 0x293   : > { %v645_v45 = vmul.f32 %v1069_v44, %v639_v43 }
 0x295   : > { %733 = vrot.lane.b32.xlu2 %v728_v42, %s1311_s13 }
 0x29a   : > { %650 = vrot.lane.b32.xlu0 %v645_v45, %s1310_s28 }
 0x2e7   : > { %v649_v48 = vpop.permute.xlu2 %648 }
 0x2ef   : > { %v734_v51 = vpop.permute.xlu2 %733 }
 0x2fc   : > { %v566_v47 = vpop.permute.xlu1 %565 }
 0x2fd   : > { %572 = vst.msk [vmem:[%s1612_s12] sm:$0xff] %vm571_vm11, %v566_v47 }
 0x2fe   : > { %655 = vst.msk [vmem:[%s1612_s12] sm:$0xff] %vm654_vm12, %v649_v48 }
 0x304   : > { %v568_v46 = vpop.permute.xlu0 %567  ;;  %v732_v49 = vpop.permute.xlu1 %731 }
 0x305   : > { %573 = vst.msk [vmem:[%s1612_s12 + $0x8] sm:$0xff] %vm571_vm11, %v568_v46 }
 0x306   : > { %738 = vst.msk [vmem:[%s1612_s12] sm:$0xff] %vm737_vm13, %v732_v49 }
 0x30c   : > { %v651_v50 = vpop.permute.xlu0 %650 }
 0x30d   : > { %656 = vst.msk [vmem:[%s1612_s12 + $0x8] sm:$0xff] %vm654_vm12, %v651_v50 }
 0x30e   : > { %739 = vst.msk [vmem:[%s1612_s12 + $0x8] sm:$0xff] %vm737_vm13, %v734_v51 }
 0x30f   : > { %1247 = shalt.err (!%p1244_p2)
}
 0x310   : > { %s1312_s3 = smov 128   ;;  %s1313_s30 = smov 8  }
 0x311   : > { %951 = dma.vmem_to_hbm [thread:$0]  (%p1420_p7), %s754_s16, 256, %s756_s23, %s741_s22, %s1312_s3, %s1312_s3, %s1313_s30  }
 0x312 PF: > { %s770_s26 = sand.u32 1, %s1282_s18   ;;  %p1698_p10 = scmp.ge.s32.totalorder %s1294_s21, 2 }
 0x313   : > { %s771_s15 = scalar_lea.sflag [#allocation4], %s770_s26 }
 0x314   : > { %p971_p13 = pnand %p1698_p10, %p1379_p6 }
 0x316   : > { %p972_p0 = pneg %p971_p13 }
 0x318   : > { %1277 = dma.done.wait (%p972_p0), %s771_s15, 256  }
 0x319   : > { %1279 = vsyncadd (%p972_p0), %s771_s15, 4294967040  ;;  %s1699_s21 = sld [smem:[#allocation18_spill]]  ;;  %s1702_s18 = smov %s1286_s19 }
 0x31a   : > { %s1700_s12 = sld [smem:[#allocation16_spill]] }
 0x31b   : > { %s1701_s20 = sld [smem:[#allocation19_spill]] }
 0x31f   : > { %p22_p12 = scmp.ge.s32.totalorder %s1699_s21, 4  }
 0x320   : > { %s1703_s19 = smov %s1700_s12 }
 0x321   :  { %24 = sbr.rel (!%p22_p12) target bundleno = 11 (0xb), region = 117 }
 0x326   :  { %777 = vsyncpa [#allocation3], 1 }
 0x327   :  { %779 = vsyncpa [#allocation3 + $0x1], 1 }
 0x328   :  { %780 = vsyncpa [#allocation6], 1 }
 0x329   :  { %781 = vsyncpa [#allocation9], 1 }
 0x32a   :  { %783 = vsyncpa [#allocation9 + $0x1], 1 }
 0x32b   :  { %784 = vsyncpa [#allocation4], 1 }
 0x32c   :  { %786 = vsyncpa [#allocation4 + $0x1], 1 }

</bundles_post_ra>
